<compile_context>
chip_gen: v5e
topology: v5e:2x2
jax: 0.10.0
libtpu: 0.0.40
codegen_flags: <defaults>
</compile_context>

<pallas_src>
import jax
import jax.numpy as jnp
from jax.experimental import pallas as pl
from jax.experimental.pallas import tpu as pltpu

ALPHA = 1.0
L1_RATIO = 0.5
LN_EPS = 1e-5
_LOSS_SUBLANES = 8  # f32 partial-sum blocks are always 8 sublanes


def _io_sublanes(itemsize):
    """Packed sublane count for the streamed I/O dtype."""
    return {4: 8, 2: 16, 1: 32}.get(itemsize, 8)


def _vmem_budget_and_limit():
    """(tile-selection budget, vmem_limit_bytes), generation aware.

    v5e/v6e have 128 MiB physical VMEM -> push the working set up for
    HBM-roofline streaming.  v7x (or unknown) has 64 MiB per TC -> stay
    conservative so 3 streams x 2 buffers + temporaries never spill.
    """
    try:
        kind = jax.devices()[0].device_kind.lower()
    except Exception:  # pragma: no cover
        kind = ""
    if "v5" in kind or "v6" in kind:
        return 56 * 1024 * 1024, 96 * 1024 * 1024
    return 36 * 1024 * 1024, 48 * 1024 * 1024


def _choose_row_tile(rows, D, itemsize, sublanes, budget_bytes):
    """Biggest sublane-aligned row tile whose double-buffered streams + f32
    temporaries fit the budget, with >=2 grid tiles when possible (v7x)."""
    # 2 inputs + 1 output double-buffered in I/O dtype, plus ~4 f32 temps.
    per_row = (6 * itemsize + 4 * 4) * D
    tile = budget_bytes // max(per_row, 1)
    tile = max(sublanes, min(1024, (tile // sublanes) * sublanes))
    rows_rounded = ((rows + sublanes - 1) // sublanes) * sublanes
    tile = min(tile, rows_rounded)
    # Ensure at least 2 grid tiles when there is enough work (v7x has 2 TCs;
    # on v5e/v6e this only costs one extra cheap grid step).
    if tile >= rows and rows > sublanes:
        half = (rows + 1) // 2
        tile = ((half + sublanes - 1) // sublanes) * sublanes
    return max(sublanes, tile)


def autoencoder_norm_and_enloss(embeddings, context, gamma, beta, *,
                                row_tile=None):
    """Returns (normed_word_batch, elastic_net_loss).

    normed_word_batch : (B*S, D)  == to_word_batch(LayerNorm(embeddings + context))
    elastic_net_loss  : scalar    == ElasticNetLoss(alpha=1, l1_ratio=0.5)(context)
    """
    B, S, D = embeddings.shape
    rows = B * S
    io_dtype = embeddings.dtype
    itemsize = jnp.dtype(io_dtype).itemsize
    sublanes = _io_sublanes(itemsize)

    budget, vmem_limit = _vmem_budget_and_limit()
    if row_tile is None:
        row_tile = _choose_row_tile(rows, D, itemsize, sublanes, budget)
    assert row_tile % _LOSS_SUBLANES == 0

    num_tiles = pl.cdiv(rows, row_tile)
    need_mask = (rows % row_tile) != 0

    # Free collapsing reshapes (no data movement in XLA).
    emb2 = embeddings.reshape(rows, D)
    ctx2 = context.reshape(rows, D)
    gamma2 = gamma.reshape(1, D).astype(jnp.float32)
    beta2 = beta.reshape(1, D).astype(jnp.float32)

    def _fused_kernel(emb_ref, ctx_ref, gamma_ref, beta_ref,
                      out_ref, l1_ref, l2_ref):
        c = ctx_ref[...].astype(jnp.float32)                    # (row_tile, D)
        x = emb_ref[...].astype(jnp.float32) + c                # residual add

        # LayerNorm (biased variance, matches torch.nn.LayerNorm) using a
        # single reduction pass: var = E[x^2] - mean^2.  rsqrt goes to the
        # EUP, the cross-lane means go to the XLU -- both free slots here.
        mean = jnp.mean(x, axis=-1, keepdims=True)
        mean_sq = jnp.mean(x * x, axis=-1, keepdims=True)
        var = jnp.maximum(mean_sq - mean * mean, 0.0)
        inv = jax.lax.rsqrt(var + LN_EPS)
        out_ref[...] = ((x - mean) * inv * gamma_ref[...]
                        + beta_ref[...]).astype(out_ref.dtype)

        # ElasticNet partial sums of the context tile.  Tail rows (beyond the
        # true row count) are masked out BEFORE summing; LN tail rows need no
        # masking because out-of-bounds output writes are dropped.
        if need_mask:
            row_ids = jax.lax.broadcasted_iota(jnp.int32, (row_tile, 1), 0)
            global_row = pl.program_id(0) * row_tile + row_ids
            cm = jnp.where(global_row < rows, c, 0.0)
        else:
            cm = c

        # Static (8, D) slab accumulation -> pure VPU adds, no reshape /
        # materialized copy, no cross-lane collapse in-kernel.
        n_slabs = row_tile // _LOSS_SUBLANES
        s0 = cm[0:_LOSS_SUBLANES, :]
        l1 = jnp.abs(s0)
        l2 = s0 * s0
        for k in range(1, n_slabs):
            s = cm[k * _LOSS_SUBLANES:(k + 1) * _LOSS_SUBLANES, :]
            l1 = l1 + jnp.abs(s)
            l2 = l2 + s * s
        l1_ref[...] = l1
        l2_ref[...] = l2

    bytes_accessed = (3 * rows * D * itemsize                       # emb+ctx in, out
                      + 2 * num_tiles * _LOSS_SUBLANES * D * 4)     # loss partials
    cost = pl.CostEstimate(flops=12 * rows * D,
                           transcendentals=rows,
                           bytes_accessed=int(bytes_accessed))

    out, l1p, l2p = pl.pallas_call(
        _fused_kernel,
        out_shape=(
            jax.ShapeDtypeStruct((rows, D), io_dtype),
            jax.ShapeDtypeStruct((num_tiles * _LOSS_SUBLANES, D), jnp.float32),
            jax.ShapeDtypeStruct((num_tiles * _LOSS_SUBLANES, D), jnp.float32),
        ),
        grid_spec=pltpu.PrefetchScalarGridSpec(
            num_scalar_prefetch=0,
            grid=(num_tiles,),
            in_specs=[
                pl.BlockSpec((row_tile, D), lambda i: (i, 0)),        # embeddings
                pl.BlockSpec((row_tile, D), lambda i: (i, 0)),        # context
                pl.BlockSpec((1, D), lambda i: (0, 0)),               # LN gamma
                pl.BlockSpec((1, D), lambda i: (0, 0)),               # LN beta
            ],
            out_specs=[
                pl.BlockSpec((row_tile, D), lambda i: (i, 0)),        # normed out
                pl.BlockSpec((_LOSS_SUBLANES, D), lambda i: (i, 0)),  # l1 partials
                pl.BlockSpec((_LOSS_SUBLANES, D), lambda i: (i, 0)),  # l2 partials
            ],
        ),
        compiler_params=pltpu.CompilerParams(
            dimension_semantics=("parallel",),   # no cross-step carry
            vmem_limit_bytes=vmem_limit,
        ),
        cost_estimate=cost,
    )(emb2, ctx2, gamma2, beta2)

    # Tiny final reduction + ElasticNet scaling in plain XLA.
    l1 = jnp.sum(l1p)
    l2 = jnp.sum(l2p)
    div = jnp.float32(rows * D)                  # ones_like(context).sum()
    en_loss = ALPHA * (L1_RATIO * l1 + (1.0 - L1_RATIO) * 0.5 * l2) / div
    return out, en_loss


def _reference(embeddings, context, gamma, beta):
    x = embeddings + context
    mean = jnp.mean(x, axis=-1, keepdims=True)
    var = jnp.mean(jnp.square(x - mean), axis=-1, keepdims=True)
    y = (x - mean) * jax.lax.rsqrt(var + LN_EPS) * gamma + beta
    B, S, D = embeddings.shape
    y = y.reshape(B * S, D)
    l1 = jnp.sum(jnp.abs(context))
    l2 = jnp.sum(context ** 2)
    div = jnp.float32(context.size)
    en = ALPHA * (L1_RATIO * l1 + (1.0 - L1_RATIO) * 0.5 * l2) / div
    return y, en


if __name__ == "__main__":
    # Small shapes implied by the module: B=batch, S=max_words, D=embedding_dim.
    # S=9 makes rows=18 so the kernel exercises both the multi-tile grid and
    # the in-kernel masked tail path; D is a multiple of 128 (lane-dense).
    B, S, D = 2, 9, 128
    key = jax.random.PRNGKey(0)
    k_emb, k_ctx, k_g, k_b = jax.random.split(key, 4)

    # "Outputs" of word_encoder / context_encoder (sub-modules not provided)
    embeddings = jax.random.normal(k_emb, (B, S, D), dtype=jnp.float32)
    context = jax.random.normal(k_ctx, (B, S, D), dtype=jnp.float32)

    # Deterministic LayerNorm parameters
    gamma = 1.0 + 0.1 * jax.random.normal(k_g, (D,), dtype=jnp.float32)
    beta = 0.1 * jax.random.normal(k_b, (D,), dtype=jnp.float32)

    out, en_loss = autoencoder_norm_and_enloss(embeddings, context, gamma, beta)
    out = jax.block_until_ready(out)
    en_loss = jax.block_until_ready(en_loss)

    ref_out, ref_loss = _reference(embeddings, context, gamma, beta)
    assert out.shape == (B * S, D)
    assert jnp.allclose(out, ref_out, atol=1e-4, rtol=1e-4)
    assert jnp.allclose(en_loss, ref_loss, atol=1e-4, rtol=1e-4)

    print("KERNEL_OK")
</pallas_src>

<mosaic_0001>
module attributes {stable_mosaic.version = 11 : i64} {
  func.func @_fused_kernel(%arg0: i32, %arg1: memref<16x128xf32, #tpu.memory_space<vmem>>, %arg2: memref<16x128xf32, #tpu.memory_space<vmem>>, %arg3: memref<1x128xf32, #tpu.memory_space<vmem>>, %arg4: memref<1x128xf32, #tpu.memory_space<vmem>>, %arg5: memref<16x128xf32, #tpu.memory_space<vmem>>, %arg6: memref<8x128xf32, #tpu.memory_space<vmem>>, %arg7: memref<8x128xf32, #tpu.memory_space<vmem>>) attributes {dimension_semantics = [#tpu.dimension_semantics<parallel>], iteration_bounds = array<i64: 2>, scalar_prefetch = 0 : i64, scratch_operands = 0 : i64, tpu.core_type = #tpu.core_type<tc>, window_params = [{transform_indices = @transform_0, window_bounds = array<i64: 16, 128>}, {transform_indices = @transform_1, window_bounds = array<i64: 16, 128>}, {pipeline_mode = #tpu.pipeline_mode<synchronous>, transform_indices = @transform_2, window_bounds = array<i64: 1, 128>}, {pipeline_mode = #tpu.pipeline_mode<synchronous>, transform_indices = @transform_3, window_bounds = array<i64: 1, 128>}, {transform_indices = @transform_4, window_bounds = array<i64: 16, 128>}, {transform_indices = @transform_5, window_bounds = array<i64: 8, 128>}, {transform_indices = @transform_6, window_bounds = array<i64: 8, 128>}]} {
    %c0 = arith.constant 0 : index
    %c0_0 = arith.constant 0 : index
    %0 = vector.load %arg2[%c0, %c0_0] : memref<16x128xf32, #tpu.memory_space<vmem>>, vector<16x128xf32>
    %c0_1 = arith.constant 0 : index
    %c0_2 = arith.constant 0 : index
    %1 = vector.load %arg1[%c0_1, %c0_2] : memref<16x128xf32, #tpu.memory_space<vmem>>, vector<16x128xf32>
    %2 = arith.addf %1, %0 : vector<16x128xf32>
    %cst = arith.constant dense<0.000000e+00> : vector<16xf32>
    %3 = vector.multi_reduction <add>, %2, %cst [1] : vector<16x128xf32> to vector<16xf32>
    %4 = vector.shape_cast %3 : vector<16xf32> to vector<16x1xf32>
    %cst_3 = arith.constant 1.280000e+02 : f32
    %5 = vector.broadcast %cst_3 : f32 to vector<16x1xf32>
    %6 = arith.divf %4, %5 : vector<16x1xf32>
    %7 = arith.mulf %2, %2 : vector<16x128xf32>
    %cst_4 = arith.constant dense<0.000000e+00> : vector<16xf32>
    %8 = vector.multi_reduction <add>, %7, %cst_4 [1] : vector<16x128xf32> to vector<16xf32>
    %9 = vector.shape_cast %8 : vector<16xf32> to vector<16x1xf32>
    %cst_5 = arith.constant 1.280000e+02 : f32
    %10 = vector.broadcast %cst_5 : f32 to vector<16x1xf32>
    %11 = arith.divf %9, %10 : vector<16x1xf32>
    %12 = arith.mulf %6, %6 : vector<16x1xf32>
    %13 = arith.subf %11, %12 : vector<16x1xf32>
    %cst_6 = arith.constant 0.000000e+00 : f32
    %14 = vector.broadcast %cst_6 : f32 to vector<16x1xf32>
    %15 = arith.maximumf %13, %14 : vector<16x1xf32>
    %cst_7 = arith.constant 9.99999974E-6 : f32
    %16 = vector.broadcast %cst_7 : f32 to vector<16x1xf32>
    %17 = arith.addf %15, %16 : vector<16x1xf32>
    %18 = math.rsqrt %17 : vector<16x1xf32>
    %19 = vector.broadcast %6 : vector<16x1xf32> to vector<16x128xf32>
    %20 = arith.subf %2, %19 : vector<16x128xf32>
    %21 = vector.broadcast %18 : vector<16x1xf32> to vector<16x128xf32>
    %22 = arith.mulf %20, %21 : vector<16x128xf32>
    %c0_8 = arith.constant 0 : index
    %c0_9 = arith.constant 0 : index
    %23 = vector.load %arg3[%c0_8, %c0_9] : memref<1x128xf32, #tpu.memory_space<vmem>>, vector<1x128xf32>
    %24 = vector.broadcast %23 : vector<1x128xf32> to vector<16x128xf32>
    %25 = arith.mulf %22, %24 : vector<16x128xf32>
    %c0_10 = arith.constant 0 : index
    %c0_11 = arith.constant 0 : index
    %26 = vector.load %arg4[%c0_10, %c0_11] : memref<1x128xf32, #tpu.memory_space<vmem>>, vector<1x128xf32>
    %27 = vector.broadcast %26 : vector<1x128xf32> to vector<16x128xf32>
    %28 = arith.addf %25, %27 : vector<16x128xf32>
    %c0_12 = arith.constant 0 : index
    %c0_13 = arith.constant 0 : index
    %29 = vector.load %arg5[%c0_12, %c0_13] : memref<16x128xf32, #tpu.memory_space<vmem>>, vector<16x128xf32>
    tpu.vector_store %arg5[%c0_12, %c0_13], %28 {strides = array<i32>} : memref<16x128xf32, #tpu.memory_space<vmem>>, vector<16x128xf32>,
    %30 = tpu.iota {dimensions = array<i32: 0>} : vector<16x1xi32>
    %c16_i32 = arith.constant 16 : i32
    %31 = arith.muli %arg0, %c16_i32 : i32
    %32 = vector.broadcast %31 : i32 to vector<16x1xi32>
    %33 = arith.addi %32, %30 : vector<16x1xi32>
    %c18_i32 = arith.constant 18 : i32
    %34 = vector.broadcast %c18_i32 : i32 to vector<16x1xi32>
    %35 = arith.cmpi slt, %33, %34 : vector<16x1xi32>
    %cst_14 = arith.constant 0.000000e+00 : f32
    %36 = vector.shape_cast %35 : vector<16x1xi1> to vector<16x1xi1>
    %37 = vector.broadcast %36 : vector<16x1xi1> to vector<16x128xi1>
    %38 = vector.broadcast %cst_14 : f32 to vector<16x128xf32>
    %39 = arith.select %37, %0, %38 : vector<16x128xi1>, vector<16x128xf32>
    %40 = vector.extract_strided_slice %39 {offsets = [0, 0], sizes = [8, 128], strides = [1, 1]} : vector<16x128xf32> to vector<8x128xf32>
    %41 = math.absf %40 : vector<8x128xf32>
    %42 = arith.mulf %40, %40 : vector<8x128xf32>
    %43 = vector.extract_strided_slice %39 {offsets = [8, 0], sizes = [8, 128], strides = [1, 1]} : vector<16x128xf32> to vector<8x128xf32>
    %44 = math.absf %43 : vector<8x128xf32>
    %45 = arith.addf %41, %44 : vector<8x128xf32>
    %46 = arith.mulf %43, %43 : vector<8x128xf32>
    %47 = arith.addf %42, %46 : vector<8x128xf32>
    %c0_15 = arith.constant 0 : index
    %c0_16 = arith.constant 0 : index
    %48 = vector.load %arg6[%c0_15, %c0_16] : memref<8x128xf32, #tpu.memory_space<vmem>>, vector<8x128xf32>
    tpu.vector_store %arg6[%c0_15, %c0_16], %45 {strides = array<i32>} : memref<8x128xf32, #tpu.memory_space<vmem>>, vector<8x128xf32>,
    %c0_17 = arith.constant 0 : index
    %c0_18 = arith.constant 0 : index
    %49 = vector.load %arg7[%c0_17, %c0_18] : memref<8x128xf32, #tpu.memory_space<vmem>>, vector<8x128xf32>
    tpu.vector_store %arg7[%c0_17, %c0_18], %47 {strides = array<i32>} : memref<8x128xf32, #tpu.memory_space<vmem>>, vector<8x128xf32>,
    return
  }
  func.func @transform_0(%arg0: i32) -> (i32, i32) {
    %c0_i32 = arith.constant 0 : i32
    %c0_i32_0 = arith.constant 0 : i32
    return %arg0, %c0_i32 : i32, i32
  }
  func.func @transform_1(%arg0: i32) -> (i32, i32) {
    %c0_i32 = arith.constant 0 : i32
    %c0_i32_0 = arith.constant 0 : i32
    return %arg0, %c0_i32 : i32, i32
  }
  func.func @transform_2(%arg0: i32) -> (i32, i32) {
    %c0_i32 = arith.constant 0 : i32
    %c0_i32_0 = arith.constant 0 : i32
    %c0_i32_1 = arith.constant 0 : i32
    return %c0_i32, %c0_i32_0 : i32, i32
  }
  func.func @transform_3(%arg0: i32) -> (i32, i32) {
    %c0_i32 = arith.constant 0 : i32
    %c0_i32_0 = arith.constant 0 : i32
    %c0_i32_1 = arith.constant 0 : i32
    return %c0_i32, %c0_i32_0 : i32, i32
  }
  func.func @transform_4(%arg0: i32) -> (i32, i32) {
    %c0_i32 = arith.constant 0 : i32
    %c0_i32_0 = arith.constant 0 : i32
    return %arg0, %c0_i32 : i32, i32
  }
  func.func @transform_5(%arg0: i32) -> (i32, i32) {
    %c0_i32 = arith.constant 0 : i32
    %c0_i32_0 = arith.constant 0 : i32
    return %arg0, %c0_i32 : i32, i32
  }
  func.func @transform_6(%arg0: i32) -> (i32, i32) {
    %c0_i32 = arith.constant 0 : i32
    %c0_i32_0 = arith.constant 0 : i32
    return %arg0, %c0_i32 : i32, i32
  }
}

</mosaic_0001>

<bundles_post_ra>
// kernel: tpu_custom_call.1
= control target key start
LH: loop header
LB: loop body
LE: loop exit
PB: predicated region body
PF: predicated region fallthrough
CT: control target
= control target key end

     0   :  { %s1353_s0 = inlined_call_operand.hbm [shape: f32[18,128], index: 0, kind: input, shape index: {}]   ;;  %s1354_s1 = inlined_call_operand.hbm [shape: f32[18,128], index: 1, kind: input, shape index: {}]   ;;  %s1355_s2 = inlined_call_operand.vmem [shape: f32[1,128], index: 2, kind: input, shape index: {}]   ;;  %s1356_s3 = inlined_call_operand.vmem [shape: f32[1,128], index: 3, kind: input, shape index: {}]   ;;  %s1357_s4 = inlined_call_operand.hbm [shape: f32[18,128], index: 4, kind: output, shape index: {0}]   ;;  %s1358_s5 = inlined_call_operand.hbm [shape: f32[16,128], index: 5, kind: output, shape index: {1}]   ;;  %s1359_s6 = inlined_call_operand.hbm [shape: f32[16,128], index: 6, kind: output, shape index: {2}]  }
   0x1   :  { %1367 = sst [smem:[#allocation17_spill]] %s1353_s0 }
   0x2   :  { %1368 = sst [smem:[#allocation18_spill]] %s1354_s1 }
   0x3   :  { %1369 = sst [smem:[#allocation19_spill]] %s1355_s2 }
   0x4   :  { %12 = vsyncpa [#allocation3], 0 }
   0x5   :  { %14 = vsyncpa [#allocation3 + $0x1], 0 }
   0x6   :  { %15 = vsyncpa [#allocation6], 0 }
   0x7   :  { %17 = vsyncpa [#allocation6 + $0x1], 0 }
   0x8   :  { %18 = vsyncpa [#allocation4], 0 }
   0x9   :  { %20 = vsyncpa [#allocation4 + $0x1], 0 }
   0xa   :  { %21 = vsyncpa [#allocation9], 0 }
   0xb   :  { %23 = vsyncpa [#allocation9 + $0x1], 0  ;;  %s1048_s21 = smov 0   ;;  %s1050_s22 = smov 0  }
   0xc   :  { %s1052_s23 = smov 0   ;;  %s1054_s24 = smov 0  }
   0xd LB: > { %s1069_s25 = sadd.s32 4294967295, %s1001_s24   ;;  %s1360_s26 = sadd.s32 4294967294, %s1001_s24   ;;  %s1001_s24 = sphi %s1054_s24, %s1388_s24   ;;  %s997_s23 = sphi %s1052_s23, %s1392_s23   ;;  %s993_s22 = sphi %s1050_s22, %s1391_s22   ;;  %s989_s21 = sphi %s1048_s21, %s1390_s21  }
   0xe   : > { %s1073_s27 = sadd.s32 1, %s1001_s24   ;;  %s36_s28 = sadd.s32 1, %s997_s23 }
   0xf   : > { %1370 = sst [smem:[#allocation15_spill]] %s1073_s27  ;;  %s33_s29 = ssub.s32 %s1001_s24, %s1073_s27 }
  0x10   : > { %p43_p0 = scmp.ne.s32.totalorder %s997_s23, %s993_s22  ;;  %p34_p1 = scmp.eq.s32.totalorder %s33_s29, 0 }
  0x11   : > { %p44_p2 = scmp.eq.s32.totalorder %s1001_s24, 0  ;;  %p49_p3 = scmp.ne.s32.totalorder %s993_s22, %s989_s21 }
  0x12   : > { %p50_p4 = scmp.eq.s32.totalorder %s1069_s25, 0  ;;  %p141_p7 = scmp.eq.s32.totalorder %s1069_s25, 1 }
  0x13   : > { %s1085_s30 = scalar_select %p34_p1, %s997_s23, %s36_s28  }
  0x14   : > { %p1087_p5 = por %p44_p2, %p43_p0  ;;  %p1091_p6 = por %p50_p4, %p49_p3 }
  0x15   : > { %1371 = sst [smem:[#allocation16_spill]] %s1085_s30  ;;  %p147_p8 = scmp.eq.s32.totalorder %s1360_s26, 1 }
  0x16   : > { %p1098_p9 = por %p141_p7, %p43_p0  ;;  %p1364_p11 = scmp.ge.s32.totalorder %s1001_s24, 2 }
  0x17   : > { %p1102_p10 = por %p147_p8, %p49_p3 }
  0x18   : > { %221 = sbr.rel (%p1364_p11) target bundleno = 114 (0x72), region = 24 }
  0x19   : > { %s1375_s10 = scalar_select %p1102_p10, 1, 0 }
  0x1d   : > { %224 = sbr.rel (!%p1087_p5) target bundleno = 72 (0x48), region = 28  ;;  %s225_s11 = sand.u32 (%p1087_p5), 1, %s997_s23  }
  0x1e   : > { %s681_s12 = sshll.u32 (%p1087_p5), %s1001_s24, 1  ;;  %s680_s13 = sshll.u32 (%p1087_p5), %s225_s11, 4 }
  0x1f   : > { %s231_s14 = ssub.s32 (%p1087_p5), 3, %s681_s12  ;;  %s1116_s18 = scalar_lea.sflag (%p1087_p5), [#allocation3], %s225_s11 }
  0x20   : > { %p232_p12 = scmp.lt.s32.totalorder (%p1087_p5), %s231_s14, 2  ;;  %s229_s19 = scalar_lea.vmem (%p1087_p5), [#allocation2], %s680_s13 }
  0x22   : > { %s1394_s14 = smov (!%p232_p12, %s231_s14), 2 }
  0x23   : > { %s682_s15 = sshll.u32 %s1394_s14, 3 }
  0x24   : > { %s235_s16 = ssub.s32 16, %s682_s15 }
  0x25   : > { %s236_s17 = sshll.u32 %s235_s16, 4 }
  0x26   : > { %237 = vsyncadd %s1116_s18, %s236_s17  ;;  %p1119_p13 = scmp.ne.s32.totalorder %s682_s15, 0  ;;  %s714_s28 = sshll.u32 %s1001_s24, 4 }
  0x27   : > { %s1377_s0 = sld [smem:[#allocation17_spill]]  ;;  %s1127_s30 = sshll.u32 %s229_s19, 4  ;;  %s245_s30 = int_to_ptr.vmem [resolvable:$true] %s1127_s30 }
  0x28   : > { %s1361_s13 = sshll.u32 %s1394_s14, 7 }
  0x29   : > { %s784_s15 = sshrl.u32 %s1361_s13, 4 }
  0x2d   : > { %s240_s26 = scalar_lea.hbm %s1377_s0, %s714_s28  ;;  %s793_s19 = scalar_lea.hbm %s1377_s0, 24 }
  0x2e   : > { %s242_s11 = sshll.u32 %s240_s26, 4  ;;  %s1130_s11 = int_to_ptr.hbm [resolvable:$true] %s242_s11 }
  0x2f   : > { %s782_s16 = sshra.s32 %s1130_s11, 4  ;;  %s783_s16 = int_to_ptr.hbm [resolvable:$true] %s782_s16 }
  0x30   : > { %s789_s17 = scalar_lea.hbm %s783_s16, %s784_s15  ;;  %p794_p3 = scmp.lt.s32.totalorder %s783_s16, %s1377_s0 }
  0x31   : > { %p790_p0 = scmp.ne.s32.totalorder %s783_s16, %s789_s17  ;;  %p795_p4 = scmp.lt.s32.totalorder %s793_s19, %s789_s17 }
  0x33   : > { %p791_p1 = pnand %p790_p0, %p1119_p13  ;;  %p796_p7 = por %p795_p4, %p794_p3 }
  0x35   : > { %p792_p2 = pneg %p791_p1 }
  0x37   : > { %p797_p8 = pnand %p796_p7, %p792_p2 }
  0x39   : > { %800 = shalt.err (!%p797_p8)
}
  0x3a   : > { %s801_s13 = sshra.s32 %s245_s30, 4  ;;  %s1003_s29 = smov [#allocation2]   ;;  %s802_s13 = int_to_ptr.vmem [resolvable:$true] %s801_s13 }
  0x3b   : > { %s808_s27 = scalar_lea.vmem %s802_s13, %s784_s15  ;;  %s812_s28 = scalar_lea.vmem %s1003_s29, 32 }
  0x3c   : > { %p809_p12 = scmp.ne.s32.totalorder %s802_s13, %s808_s27  ;;  %p814_p11 = scmp.lt.s32.totalorder %s812_s28, %s808_s27 }
  0x3e   : > { %p810_p0 = pnand %p809_p12, %p1119_p13 }
  0x40   : > { %p811_p1 = pneg %p810_p0 }
  0x42   : > { %p816_p10 = pnand %p814_p11, %p811_p1 }
  0x44   : > { %819 = shalt.err (!%p816_p10)
}
  0x45   : > { %s1004_s16 = smov 128   ;;  %s1005_s17 = smov 8  }
  0x46   : > { %s1378_s19 = sshll.u32 %s1394_s14, 7 }
  0x47   : > { %250 = dma.hbm_to_vmem [thread:$0]  (%p1119_p13), %s1130_s11, %s1378_s19, %s245_s30, %s1116_s18, %s1004_s16, %s1004_s16, %s1005_s17  }
  0x48 PF: > { %253 = sbr.rel (!%p1087_p5) target bundleno = 114 (0x72), region = 32  ;;  %s254_s27 = sand.u32 (%p1087_p5), 1, %s997_s23  }
  0x49   : > { %s688_s13 = sshll.u32 (%p1087_p5), %s1001_s24, 1  ;;  %s687_s15 = sshll.u32 (%p1087_p5), %s254_s27, 4 }
  0x4a   : > { %s260_s12 = ssub.s32 (%p1087_p5), 3, %s688_s13  ;;  %s1163_s28 = scalar_lea.sflag (%p1087_p5), [#allocation6], %s254_s27 }
  0x4b   : > { %p261_p10 = scmp.lt.s32.totalorder (%p1087_p5), %s260_s12, 2  ;;  %s258_s30 = scalar_lea.vmem (%p1087_p5), [#allocation5], %s687_s15 }
  0x4d   : > { %s1396_s12 = smov (!%p261_p10, %s260_s12), 2 }
  0x4e   : > { %s689_s26 = sshll.u32 %s1396_s12, 3 }
  0x4f   : > { %s264_s29 = ssub.s32 16, %s689_s26 }
  0x50   : > { %s265_s20 = sshll.u32 %s264_s29, 4 }
  0x51   : > { %266 = vsyncadd %s1163_s28, %s265_s20  ;;  %p1166_p5 = scmp.ne.s32.totalorder %s689_s26, 0  ;;  %s715_s14 = sshll.u32 %s1001_s24, 4 }
  0x52   : > { %s1380_s1 = sld [smem:[#allocation18_spill]]  ;;  %s1174_s17 = sshll.u32 %s258_s30, 4  ;;  %s274_s17 = int_to_ptr.vmem [resolvable:$true] %s1174_s17 }
  0x53   : > { %s693_s27 = sshll.u32 %s1396_s12, 7 }
  0x54   : > { %s823_s15 = sshrl.u32 %s693_s27, 4 }
  0x58   : > { %s269_s16 = scalar_lea.hbm %s1380_s1, %s715_s14  ;;  %s832_s30 = scalar_lea.hbm %s1380_s1, 24 }
  0x59   : > { %s271_s19 = sshll.u32 %s269_s16, 4  ;;  %s1177_s19 = int_to_ptr.hbm [resolvable:$true] %s271_s19 }
  0x5a   : > { %s821_s13 = sshra.s32 %s1177_s19, 4  ;;  %s822_s13 = int_to_ptr.hbm [resolvable:$true] %s821_s13 }
  0x5b   : > { %s828_s26 = scalar_lea.hbm %s822_s13, %s823_s15  ;;  %p833_p3 = scmp.lt.s32.totalorder %s822_s13, %s1380_s1 }
  0x5c   : > { %p829_p11 = scmp.ne.s32.totalorder %s822_s13, %s828_s26  ;;  %p834_p4 = scmp.lt.s32.totalorder %s832_s30, %s828_s26 }
  0x5e   : > { %p830_p13 = pnand %p829_p11, %p1166_p5  ;;  %p835_p7 = por %p834_p4, %p833_p3 }
  0x60   : > { %p831_p2 = pneg %p830_p13 }
  0x62   : > { %p836_p8 = pnand %p835_p7, %p831_p2 }
  0x64   : > { %839 = shalt.err (!%p836_p8)
}
  0x65   : > { %s840_s11 = sshra.s32 %s274_s17, 4  ;;  %s1006_s29 = smov [#allocation5]   ;;  %s841_s11 = int_to_ptr.vmem [resolvable:$true] %s840_s11 }
  0x66   : > { %s847_s16 = scalar_lea.vmem %s841_s11, %s823_s15  ;;  %s851_s20 = scalar_lea.vmem %s1006_s29, 32 }
  0x67   : > { %p848_p12 = scmp.ne.s32.totalorder %s841_s11, %s847_s16  ;;  %p853_p10 = scmp.lt.s32.totalorder %s851_s20, %s847_s16 }
  0x69   : > { %p849_p0 = pnand %p848_p12, %p1166_p5 }
  0x6b   : > { %p850_p1 = pneg %p849_p0 }
  0x6d   : > { %p855_p11 = pnand %p853_p10, %p850_p1 }
  0x6f   : > { %858 = shalt.err (!%p855_p11)
}
  0x70   : > { %s1007_s13 = smov 128   ;;  %s1008_s26 = smov 8  }
  0x71   : > { %279 = dma.hbm_to_vmem [thread:$0]  (%p1166_p5), %s1177_s19, %s693_s27, %s274_s17, %s1163_s28, %s1007_s13, %s1007_s13, %s1008_s26  }
  0x72 PF: > { %p694_p13 = scmp.ge.s32.totalorder %s1001_s24, 1  ;;  %p281_p2 = scmp.lt.s32.totalorder %s1001_s24, 3 }
  0x74   : > { %p282_p3 = pnand %p694_p13, %p281_p2 }
  0x75   : > { %s1206_s15 = sand.u32 (!%p282_p3), 1, %s993_s22  }
  0x76   : > { %285 = sbr.rel (%p282_p3) target bundleno = 349 (0x15d), region = 36  ;;  %s1209_s30 = sshll.u32 (!%p282_p3), %s1206_s15, 4 }
  0x77   : > { %s288_s7 = scalar_lea.sflag (!%p282_p3), [#allocation3], %s1206_s15  ;;  %s291_s12 = scalar_lea.vmem (!%p282_p3), [#allocation2], %s1209_s30 }
  0x7b   : > { %972 = dma.done.wait (%p1091_p6), %s288_s7, 256  }
  0x7c   : > { %974 = vsyncadd (%p1091_p6), %s288_s7, 4294967040  ;;  %s298_s28 = scalar_lea.sflag [#allocation6], %s1206_s15  ;;  %s301_s17 = scalar_lea.vmem [#allocation5], %s1209_s30 }
  0x7d   : > { %976 = dma.done.wait (%p1091_p6), %s298_s28, 256  }
  0x7e   : > { %978 = vsyncadd (%p1091_p6), %s298_s28, 4294967040  ;;  %v434_v0 = vlaneseq  ;;  %s700_s19 = sshll.u32 %s1069_s25, 4  ;;  %v361_v6 = vld [vmem:[%s301_s17] sm:$0xff]  ;;  %s698_s27 = sshll.u32 %s1206_s15, 3  ;;  %v362_v10 = vld [vmem:[%s301_s17 + $0x8] sm:$0xff]  ;;  %v1009_v22 = vmov 128.0  }
  0x7f   : > { %v438_v1 = vstv %s700_s19  ;;  %v363_v7 = vld [vmem:[%s291_s12] sm:$0xff]  ;;  %v364_v13 = vld [vmem:[%s291_s12 + $0x8] sm:$0xff]  ;;  %s1234_s8 = scalar_lea.vmem [#allocation8], %s698_s27  ;;  %s1237_s14 = scalar_lea.vmem [#allocation10], %s698_s27  ;;  %776 = vrcp.f32 %v1009_v22 }
  0x80   : > { %v435_v2 = vshrl.u32 %v434_v0, 7  ;;  %v1226_v8 = vadd.f32 %v363_v7, %v361_v6  ;;  %v1232_v18 = vadd.f32 %v364_v13, %v362_v10  ;;  %s462_s18 = sand.u32 1, %s1069_s25   ;;  %s1381_s2 = sld [smem:[#allocation19_spill]]  ;;  %v775_v56 = vld [vmem:[%s1356_s3] ss:$0 sm:$0xff] }
  0x81   : > { %s331_s13 = scalar_lea.vmem [#allocation7], %s1209_s30  ;;  %s1365_s26 = scalar_lea.sflag [#allocation4], %s1206_s15 }
  0x82   : > { %v439_v3 = vadd.s32 %v438_v1, %v435_v2  ;;  %v436_v4 = vadd.s32 8, %v435_v2  ;;  %367 = vadd.xlane.f32.xlu0 %v1226_v8  ;;  %v380_v15 = vmul.f32 %v1226_v8, %v1226_v8  ;;  %v381_v21 = vmul.f32 %v1232_v18, %v1232_v18  ;;  %s1256_s7 = scalar_lea.sflag [#allocation9], %s462_s18  ;;  %s704_s30 = sshll.u32 (%p1098_p9), %s1069_s25, 1 }
  0x83   : > { %s476_s12 = ssub.s32 (%p1098_p9), 3, %s704_s30 }
  0x84   : > { %vm441_vm0 = vcmp.lt.s32.totalorder %v439_v3, 18  ;;  %v440_v5 = vadd.s32 %v438_v1, %v436_v4  ;;  %382 = vadd.xlane.f32.xlu1 %v380_v15  ;;  %p477_p6 = scmp.lt.s32.totalorder (%p1098_p9), %s476_s12, 2 }
  0x85   : > { %v447_v9 = vsel %vm441_vm0, %v361_v6, 0.0  ;;  %v777_v23 = vpop.eup %776 }
  0x86   : > { %vm442_vm1 = vcmp.lt.s32.totalorder %v440_v5, 18  ;;  %v449_v11 = vand.u32 2147483647, %v447_v9  ;;  %v450_v12 = vmul.f32 %v447_v9, %v447_v9  ;;  %v372_v24 = vmul.f32 128.0, %v777_v23  ;;  %v774_v53 = vld [vmem:[%s1381_s2] ss:$0 sm:$0xff] }
  0x87   : > { %v448_v14 = vsel %vm442_vm1, %v362_v10, 0.0  ;;  %vm376_vm2 = vweird.f32 %v777_v23 }
  0x88   : > { %v451_v16 = vand.u32 2147483647, %v448_v14  ;;  %v453_v17 = vmul.f32 %v448_v14, %v448_v14  ;;  %v373_v25 = vsub.f32 1.0, %v372_v24 }
  0x8a   : > { %v452_v19 = vadd.f32 %v451_v16, %v449_v11  ;;  %v454_v20 = vadd.f32 %v453_v17, %v450_v12  ;;  %369 = vadd.xlane.f32.xlu0 %v1232_v18  ;;  %v374_v26 = vmul.f32 %v777_v23, %v373_v25 }
  0x8c   : > { %455 = vst [vmem:[%s1234_s8] sm:$0xff] %v452_v19  ;;  %384 = vadd.xlane.f32.xlu1 %v381_v21  ;;  %v375_v27 = vadd.f32 %v777_v23, %v374_v26 }
  0x8d   : > { %456 = vst [vmem:[%s1237_s14] sm:$0xff] %v454_v20 }
  0x8e   : > { %v377_v28 = vsel %vm376_vm2, %v777_v23, %v375_v27 }
  0xf5   : > { %v368_v29 = vpop.xlane.xlu0 %367 }
  0xf6   : > { %v378_v30 = vmul.f32 %v377_v28, %v368_v29 }
  0xf7   : > { %v383_v31 = vpop.xlane.xlu1 %382 }
  0xf8   : > { %v388_v32 = vmul.f32 %v378_v30, %v378_v30  ;;  %v386_v33 = vmul.f32 %v383_v31, %v377_v28  ;;  %v416_v52 = vsub.f32 %v1226_v8, %v378_v30 }
  0xfa   : > { %v390_v34 = vsub.f32 %v386_v33, %v388_v32 }
  0xfc   : > { %v392_v35 = vmax.f32 %v390_v34, 0.0 }
  0xfd   : > { %v370_v36 = vpop.xlane.xlu0 %369 }
  0xfe   : > { %v394_v37 = vadd.f32 1e-05, %v392_v35  ;;  %v379_v38 = vmul.f32 %v377_v28, %v370_v36 }
  0xff   : > { %v385_v39 = vpop.xlane.xlu1 %384 }
 0x100   : > { %778 = vrsqrt.f32 %v394_v37  ;;  %v389_v40 = vmul.f32 %v379_v38, %v379_v38  ;;  %v387_v41 = vmul.f32 %v385_v39, %v377_v28  ;;  %vm402_vm4 = vweird.f32 %v394_v37 }
 0x101   : > { %v417_v0 = vsub.f32 %v1232_v18, %v379_v38 }
 0x102   : > { %v391_v42 = vsub.f32 %v387_v41, %v389_v40 }
 0x104   : > { %v393_v43 = vmax.f32 %v391_v42, 0.0 }
 0x106   : > { %v779_v44 = vpop.eup %778  ;;  %v395_v46 = vadd.f32 1e-05, %v393_v43 }
 0x107   : > { %v397_v45 = vmul.f32 %v779_v44, %v394_v37  ;;  %vm403_vm3 = vweird.f32 %v779_v44 }
 0x108   : > { %780 = vrsqrt.f32 %v395_v46  ;;  %vm404_vm5 = vmor %vm402_vm4, %vm403_vm3  ;;  %vm412_vm7 = vweird.f32 %v395_v46 }
 0x109   : > { %v398_v47 = vmul.f32 %v779_v44, %v397_v45 }
 0x10b   : > { %v399_v48 = vmul.f32 0.5, %v398_v47 }
 0x10d   : > { %v400_v49 = vsub.f32 1.5, %v399_v48 }
 0x10e   : > { %v781_v50 = vpop.eup %780 }
 0x10f   : > { %v401_v51 = vmul.f32 %v779_v44, %v400_v49  ;;  %v407_v54 = vmul.f32 %v781_v50, %v395_v46  ;;  %vm413_vm6 = vweird.f32 %v781_v50 }
 0x110   : > { %vm414_vm8 = vmor %vm412_vm7, %vm413_vm6 }
 0x111   : > { %v405_v55 = vsel %vm404_vm5, %v779_v44, %v401_v51  ;;  %v408_v58 = vmul.f32 %v781_v50, %v407_v54 }
 0x112   : > { %v418_v57 = vmul.f32 %v416_v52, %v405_v55 }
 0x113   : > { %v409_v60 = vmul.f32 0.5, %v408_v58 }
 0x114   : > { %v424_v59 = vmul.f32 %v774_v53, %v418_v57 }
 0x115   : > { %v410_v62 = vsub.f32 1.5, %v409_v60 }
 0x116   : > { %v430_v61 = vadd.f32 %v775_v56, %v424_v59 }
 0x117   : > { %v411_v63 = vmul.f32 %v781_v50, %v410_v62 }
 0x118   : > { %432 = vst [vmem:[%s331_s13] sm:$0xff] %v430_v61 }
 0x119   : > { %v415_v1 = vsel %vm414_vm8, %v781_v50, %v411_v63 }
 0x11a   : > { %v419_v2 = vmul.f32 %v417_v0, %v415_v1 }
 0x11c   : > { %v425_v3 = vmul.f32 %v774_v53, %v419_v2  ;;  %474 = sbr.rel (!%p1098_p9) target bundleno = 321 (0x141), region = 48 }
 0x11e   : > { %v431_v4 = vadd.f32 %v775_v56, %v425_v3 }
 0x120   : > { %433 = vst [vmem:[%s331_s13 + $0x8] sm:$0xff] %v431_v4 }
 0x121   : > { %s1398_s12 = smov (!%p477_p6, %s476_s12), 2 }
 0x122   : > { %s705_s28 = sshll.u32 %s1398_s12, 3 }
 0x123   : > { %s480_s17 = ssub.s32 16, %s705_s28 }
 0x124   : > { %s481_s27 = sshll.u32 %s480_s17, 4 }
 0x125   : > { %482 = vsyncadd %s1365_s26, %s481_s27  ;;  %p1266_p5 = scmp.ne.s32.totalorder %s705_s28, 0  ;;  %s485_s29 = scalar_lea.hbm %s1357_s4, %s700_s19 }
 0x126   : > { %s487_s20 = sshll.u32 %s331_s13, 4  ;;  %s489_s30 = sshll.u32 %s485_s29, 4  ;;  %s1275_s20 = int_to_ptr.vmem [resolvable:$true] %s487_s20  ;;  %s1277_s30 = int_to_ptr.hbm [resolvable:$true] %s489_s30 }
 0x127   : > { %s1366_s17 = sshll.u32 %s1398_s12, 7  ;;  %s860_s27 = sshra.s32 %s1275_s20, 4  ;;  %s861_s27 = int_to_ptr.vmem [resolvable:$true] %s860_s27 }
 0x128   : > { %s862_s28 = sshrl.u32 %s1366_s17, 4  ;;  %s1010_s11 = smov [#allocation7]  }
 0x129   : > { %s867_s26 = scalar_lea.vmem %s861_s27, %s862_s28  ;;  %s871_s16 = scalar_lea.vmem %s1010_s11, 32 }
 0x12a   : > { %p868_p4 = scmp.ne.s32.totalorder %s861_s27, %s867_s26  ;;  %p873_p12 = scmp.lt.s32.totalorder %s871_s16, %s867_s26 }
 0x12c   : > { %p869_p7 = pnand %p868_p4, %p1266_p5 }
 0x12e   : > { %p870_p8 = pneg %p869_p7 }
 0x130   : > { %p875_p0 = pnand %p873_p12, %p870_p8 }
 0x132   : > { %878 = shalt.err (!%p875_p0)
}
 0x133   : > { %s879_s19 = sshra.s32 %s1277_s30, 4  ;;  %s890_s27 = scalar_lea.hbm %s1357_s4, 24  ;;  %s880_s19 = int_to_ptr.hbm [resolvable:$true] %s879_s19 }
 0x134   : > { %s886_s13 = scalar_lea.hbm %s880_s19, %s862_s28  ;;  %p891_p13 = scmp.lt.s32.totalorder %s880_s19, %s1357_s4 }
 0x135   : > { %p887_p1 = scmp.ne.s32.totalorder %s880_s19, %s886_s13  ;;  %p892_p2 = scmp.lt.s32.totalorder %s890_s27, %s886_s13 }
 0x137   : > { %p888_p10 = pnand %p887_p1, %p1266_p5  ;;  %p893_p3 = por %p892_p2, %p891_p13 }
 0x139   : > { %p889_p11 = pneg %p888_p10 }
 0x13b   : > { %p894_p6 = pnand %p893_p3, %p889_p11 }
 0x13d   : > { %897 = shalt.err (!%p894_p6)
}
 0x13e   : > { %s1011_s26 = smov 128   ;;  %s1012_s28 = smov 8  }
 0x13f   : > { %s1383_s11 = scalar_lea.sflag [#allocation4], %s1206_s15  ;;  %s1384_s16 = sshll.u32 %s1398_s12, 7 }
 0x140   : > { %495 = dma.vmem_to_hbm [thread:$0]  (%p1266_p5), %s1275_s20, %s1384_s16, %s1277_s30, %s1383_s11, %s1011_s26, %s1011_s26, %s1012_s28  }
 0x141 PF: > { %s710_s0 = sshll.u32 %s1069_s25, 3  ;;  %s504_s1 = sshll.u32 %s1234_s8, 4  ;;  %s505_s1 = int_to_ptr.vmem [resolvable:$true] %s504_s1 }
 0x142   : > { %s502_s13 = scalar_lea.hbm %s1358_s5, %s710_s0  ;;  %s516_s18 = scalar_lea.hbm %s1359_s6, %s710_s0 }
 0x143   : > { %s506_s29 = sshll.u32 %s502_s13, 4  ;;  %s518_s15 = sshll.u32 %s1237_s14, 4  ;;  %s507_s29 = int_to_ptr.hbm [resolvable:$true] %s506_s29  ;;  %s519_s15 = int_to_ptr.vmem [resolvable:$true] %s518_s15 }
 0x144   : > { %s913_s12 = sshra.s32 %s507_s29, 4  ;;  %s919_s30 = scalar_lea.hbm %s1358_s5, 16  ;;  %s914_s12 = int_to_ptr.hbm [resolvable:$true] %s913_s12 }
 0x145   : > { %s915_s20 = scalar_lea.hbm %s914_s12, 8  ;;  %p920_p8 = scmp.lt.s32.totalorder %s914_s12, %s1358_s5 }
 0x146   : > { %p916_p5 = scmp.ne.s32.totalorder %s914_s12, %s915_s20  ;;  %p921_p12 = scmp.lt.s32.totalorder %s919_s30, %s915_s20 }
 0x148   : > { %p917_p4 = pnand %p916_p5, %p1098_p9  ;;  %p922_p0 = por %p921_p12, %p920_p8 }
 0x14a   : > { %p918_p7 = pneg %p917_p4 }
 0x14c   : > { %p923_p1 = pnand %p922_p0, %p918_p7 }
 0x14e   : > { %926 = shalt.err (!%p923_p1)
}
 0x14f   : > { %719 = dma.vmem_to_hbm [thread:$0]  (%p1098_p9), %s505_s1, 128, %s507_s29, %s1256_s7  }
 0x150   : > { %s520_s2 = sshll.u32 %s516_s18, 4  ;;  %s947_s17 = scalar_lea.hbm %s1359_s6, 16  ;;  %s521_s2 = int_to_ptr.hbm [resolvable:$true] %s520_s2 }
 0x151   : > { %s941_s14 = sshra.s32 %s521_s2, 4  ;;  %s942_s14 = int_to_ptr.hbm [resolvable:$true] %s941_s14 }
 0x152   : > { %s943_s11 = scalar_lea.hbm %s942_s14, 8  ;;  %p948_p2 = scmp.lt.s32.totalorder %s942_s14, %s1359_s6 }
 0x153   : > { %p944_p10 = scmp.ne.s32.totalorder %s942_s14, %s943_s11  ;;  %p949_p3 = scmp.lt.s32.totalorder %s947_s17, %s943_s11 }
 0x155   : > { %p945_p11 = pnand %p944_p10, %p1098_p9  ;;  %p950_p6 = por %p949_p3, %p948_p2 }
 0x157   : > { %p946_p13 = pneg %p945_p11 }
 0x159   : > { %p951_p5 = pnand %p950_p6, %p946_p13 }
 0x15b   : > { %954 = shalt.err (!%p951_p5)
}
 0x15c   : > { %720 = dma.vmem_to_hbm [thread:$0]  (%p1098_p9), %s519_s15, 128, %s521_s2, %s1256_s7  }
 0x15d PF: > { %s532_s1 = sand.u32 1, %s989_s21   ;;  %p1385_p4 = scmp.ne.s32.totalorder %s1375_s10, 0 }
 0x15e   : > { %p1386_p7 = scmp.ge.s32.totalorder %s1001_s24, 2  ;;  %s533_s29 = scalar_lea.sflag [#allocation4], %s532_s1 }
 0x160   : > { %p725_p8 = pnand %p1386_p7, %p1385_p4 }
 0x162   : > { %p726_p12 = pneg %p725_p8 }
 0x164   : > { %980 = dma.done.wait (%p726_p12), %s533_s29, 256  }
 0x165   : > { %982 = vsyncadd (%p726_p12), %s533_s29, 4294967040  ;;  %s1387_s27 = sadd.s32 4294967294, %s1001_s24  }
 0x166   : > { %s542_s18 = sand.u32 1, %s1387_s27  }
 0x167   : > { %s543_s12 = scalar_lea.sflag [#allocation9], %s542_s18 }
 0x168   : > { %984 = dma.done.wait (%p726_p12), %s543_s12, 256  }
 0x169   : > { %986 = vsyncadd (%p726_p12), %s543_s12, 4294967040  ;;  %s1388_s24 = sld [smem:[#allocation15_spill]]  ;;  %s1390_s21 = smov %s993_s22 }
 0x16a   : > { %s1389_s9 = sld [smem:[#allocation16_spill]]  ;;  %s1391_s22 = smov %s997_s23 }
 0x16f   : > { %p26_p9 = scmp.ge.s32.totalorder %s1388_s24, 4  }
 0x170   : > { %s1392_s23 = smov %s1389_s9 }
 0x171   :  { %28 = sbr.rel (!%p26_p9) target bundleno = 13 (0xd), region = 126 }
 0x176   :  { %559 = vsyncpa [#allocation3], 1 }
 0x177   :  { %561 = vsyncpa [#allocation3 + $0x1], 1 }
 0x178   :  { %562 = vsyncpa [#allocation6], 1 }
 0x179   :  { %564 = vsyncpa [#allocation6 + $0x1], 1 }
 0x17a   :  { %565 = vsyncpa [#allocation4], 1 }
 0x17b   :  { %567 = vsyncpa [#allocation4 + $0x1], 1 }
 0x17c   :  { %568 = vsyncpa [#allocation9], 1 }
 0x17d   :  { %570 = vsyncpa [#allocation9 + $0x1], 1 }

</bundles_post_ra>
